<compile_context>
chip_gen: v7x
topology: tpu7x:2x2x1
jax: 0.10.0
libtpu: 0.0.40
codegen_flags: <defaults>
</compile_context>

<pallas_src>
import jax
import jax.numpy as jnp
from jax.experimental import pallas as pl
from jax.experimental.pallas import tpu as pltpu


def _round_up(x, m):
    return (x + m - 1) // m * m


# ----------------------------- Pallas kernel ---------------------------------


def _patch_embed_norm_kernel(x_ref, w_ref, b_ref, g_ref, beta_ref, o_ref):
    """Fused patch-embedding matmul + bias + LayerNorm for one row tile.

    x_ref:    (TM, Pd) bf16  im2col'd image patches (rows = batch * tokens)
    w_ref:    (Pd, D)  bf16  conv weight reshaped to (C*kh*kw, D)
    b_ref:    (1, D)   f32   conv bias
    g_ref:    (1, D)   f32   LayerNorm gamma
    beta_ref: (1, D)   f32   LayerNorm beta
    o_ref:    (TM, D)  f32   normalized token features
    """
    # MXU matmul: bf16 operands, f32 accumulation.
    h = jnp.dot(x_ref[...], w_ref[...], preferred_element_type=jnp.float32)
    h = h + b_ref[...]

    # TODO(synk): the 12 vit_base transformer blocks (MHA + MLP, residuals)
    #             would run here between patch_embed and the final norm.

    # Final LayerNorm (timm ViT eps=1e-6, biased variance like torch).
    mean = jnp.mean(h, axis=-1, keepdims=True)
    var = jnp.mean(jnp.square(h - mean), axis=-1, keepdims=True)
    h = (h - mean) * jax.lax.rsqrt(var + 1e-6)
    o_ref[...] = h * g_ref[...] + beta_ref[...]


def patch_embed_norm(patches, w, b, gamma, beta, *, tm=None):
    """patches: (R, Pd) rows; returns (R, D) f32 normalized token features."""
    R, Pd = patches.shape
    D = w.shape[1]

    # Row tile: fill MXU rows at real sizes (>=128 per call), stay multi-step
    # (parallel / megacore-splittable) at toy sizes.  Pd and D are 768 = 6x128,
    # so all loads/stores are lane-dense (no masked vst).
    if tm is None:
        tm = 512 if R >= 1024 else (128 if R >= 128 else 8)
    Rp = _round_up(R, tm)
    if Rp != R:
        patches = jnp.pad(patches, ((0, Rp - R), (0, 0)))
    grid = (Rp // tm,)

    # bf16 operands into the MXU; accumulation stays f32 inside the kernel.
    patches = patches.astype(jnp.bfloat16)
    w = w.astype(jnp.bfloat16)

    cost = pl.CostEstimate(
        flops=2 * Rp * Pd * D + 8 * Rp * D,
        transcendentals=Rp,  # one rsqrt per row
        bytes_accessed=Rp * Pd * 2 + Pd * D * 2 + Rp * D * 4 + 3 * D * 4,
    )

    out = pl.pallas_call(
        _patch_embed_norm_kernel,
        grid=grid,
        in_specs=[
            pl.BlockSpec((tm, Pd), lambda i: (i, 0)),   # row tile (pipelined)
            pl.BlockSpec((Pd, D), lambda i: (0, 0)),    # weight stays resident
            pl.BlockSpec((1, D), lambda i: (0, 0)),
            pl.BlockSpec((1, D), lambda i: (0, 0)),
            pl.BlockSpec((1, D), lambda i: (0, 0)),
        ],
        out_specs=pl.BlockSpec((tm, D), lambda i: (i, 0)),
        out_shape=jax.ShapeDtypeStruct((Rp, D), jnp.float32),
        compiler_params=pltpu.CompilerParams(
            dimension_semantics=("parallel",),
            vmem_limit_bytes=32 * 1024 * 1024,
        ),
        cost_estimate=cost,
    )(patches, w, b, gamma, beta)
    return out[:R]


# ----------------------------- wrapper / model glue --------------------------


def _im2col_nchw(x, kernel, stride):
    """NCHW image -> (B, gh*gw, C*kernel*kernel) overlapping patches.

    Feature ordering is (C, kh, kw), matching torch Conv2d
    weight.reshape(out_channels, -1).
    TODO(synk): at production image sizes express this strided-window gather in
                the kernel's DMA instead of materializing the im2col in HBM.
    """
    B, C, H, W = x.shape
    gh = (H - kernel) // stride + 1
    gw = (W - kernel) // stride + 1
    rows = []
    for i in range(gh):
        cols = []
        for j in range(gw):
            cols.append(x[:, :, i * stride:i * stride + kernel,
                          j * stride:j * stride + kernel])
        rows.append(jnp.stack(cols, axis=1))            # (B, gw, C, k, k)
    patches = jnp.stack(rows, axis=1)                   # (B, gh, gw, C, k, k)
    return patches.reshape(B, gh * gw, C * kernel * kernel), (gh, gw)


def image_encoder_forward(x, params, *, kernel=16, stride=8):
    """ImageEncoder.forward: x (B, 3, H, W) NCHW -> (B, num_tokens * 768)."""
    B = x.shape[0]
    patches, _ = _im2col_nchw(x, kernel, stride)        # (B, N, C*k*k)
    _, N, Pd = patches.shape
    feats = patch_embed_norm(
        patches.reshape(B * N, Pd),
        params["proj_w"], params["proj_b"],
        params["norm_gamma"], params["norm_beta"])      # (B*N, D) f32
    # features.view(features.size(0), -1)
    return feats.reshape(B, N * feats.shape[-1])


if __name__ == "__main__":
    B, C, H, W = 2, 3, 32, 32          # small demo; module implies C=3, k=16, s=8
    K, S, D = 16, 8, 768
    Pd = C * K * K

    root = jax.random.PRNGKey(0)
    k_x, k_w = jax.random.split(root)

    x = jax.random.normal(k_x, (B, C, H, W), jnp.float32)

    # Conv2d(3, 768, kernel=(16,16), stride=(8,8)) weights in PyTorch layout,
    # reshaped to the (Pd, D) matmul layout the kernel consumes.
    # TODO(synk): pretrained timm weights are not reproducible in-script.
    conv_w = jax.random.normal(k_w, (D, C, K, K), jnp.float32) * 0.02
    params = {
        "proj_w": conv_w.reshape(D, Pd).T,              # (Pd, D)
        "proj_b": jnp.zeros((1, D), jnp.float32),
        "norm_gamma": jnp.ones((1, D), jnp.float32),
        "norm_beta": jnp.zeros((1, D), jnp.float32),
    }

    feats = jax.jit(image_encoder_forward)(x, params)
    jax.block_until_ready(feats)

    gh = (H - K) // S + 1
    N = gh * gh
    assert feats.shape == (B, N * D)
    assert bool(jnp.all(jnp.isfinite(feats)))

    # Pure-JAX f32 reference for the implemented slice of the model.
    patches_ref, _ = _im2col_nchw(x, K, S)
    h = patches_ref.reshape(B * N, Pd) @ params["proj_w"] + params["proj_b"]
    mu = h.mean(-1, keepdims=True)
    var = ((h - mu) ** 2).mean(-1, keepdims=True)
    ref = ((h - mu) * jax.lax.rsqrt(var + 1e-6)) * params["norm_gamma"] \
        + params["norm_beta"]
    ref = ref.reshape(B, N * D)
    assert bool(jnp.allclose(feats, ref, rtol=5e-2, atol=5e-2)), \
        float(jnp.max(jnp.abs(feats - ref)))

    print("KERNEL_OK")
</pallas_src>

<mosaic_0001>
module attributes {stable_mosaic.version = 11 : i64} {
  func.func @_patch_embed_norm_kernel(%arg0: i32, %arg1: memref<8x768xbf16, #tpu.memory_space<vmem>>, %arg2: memref<768x768xbf16, #tpu.memory_space<vmem>>, %arg3: memref<1x768xf32, #tpu.memory_space<vmem>>, %arg4: memref<1x768xf32, #tpu.memory_space<vmem>>, %arg5: memref<1x768xf32, #tpu.memory_space<vmem>>, %arg6: memref<8x768xf32, #tpu.memory_space<vmem>>) attributes {dimension_semantics = [#tpu.dimension_semantics<parallel>], iteration_bounds = array<i64: 3>, scalar_prefetch = 0 : i64, scratch_operands = 0 : i64, tpu.core_type = #tpu.core_type<tc>, window_params = [{transform_indices = @transform_0, window_bounds = array<i64: 8, 768>}, {pipeline_mode = #tpu.pipeline_mode<synchronous>, transform_indices = @transform_1, window_bounds = array<i64: 768, 768>}, {pipeline_mode = #tpu.pipeline_mode<synchronous>, transform_indices = @transform_2, window_bounds = array<i64: 1, 768>}, {pipeline_mode = #tpu.pipeline_mode<synchronous>, transform_indices = @transform_3, window_bounds = array<i64: 1, 768>}, {pipeline_mode = #tpu.pipeline_mode<synchronous>, transform_indices = @transform_4, window_bounds = array<i64: 1, 768>}, {transform_indices = @transform_5, window_bounds = array<i64: 8, 768>}]} {
    %c0 = arith.constant 0 : index
    %c0_0 = arith.constant 0 : index
    %0 = vector.load %arg1[%c0, %c0_0] : memref<8x768xbf16, #tpu.memory_space<vmem>>, vector<8x768xbf16>
    %c0_1 = arith.constant 0 : index
    %c0_2 = arith.constant 0 : index
    %1 = vector.load %arg2[%c0_1, %c0_2] : memref<768x768xbf16, #tpu.memory_space<vmem>>, vector<768x768xbf16>
    %cst = arith.constant dense<0.000000e+00> : vector<8x768xf32>
    %2 = tpu.matmul %0, %1, %cst {dimension_numbers = #tpu.dot_dimension_numbers<[1], [0], [0], [1], [0, 0, 1, 1], [], []>} : vector<8x768xbf16>, vector<768x768xbf16>, vector<8x768xf32> -> vector<8x768xf32>
    %c0_3 = arith.constant 0 : index
    %c0_4 = arith.constant 0 : index
    %3 = vector.load %arg3[%c0_3, %c0_4] : memref<1x768xf32, #tpu.memory_space<vmem>>, vector<1x768xf32>
    %4 = vector.broadcast %3 : vector<1x768xf32> to vector<8x768xf32>
    %5 = arith.addf %2, %4 : vector<8x768xf32>
    %cst_5 = arith.constant dense<0.000000e+00> : vector<8xf32>
    %6 = vector.multi_reduction <add>, %5, %cst_5 [1] : vector<8x768xf32> to vector<8xf32>
    %7 = vector.shape_cast %6 : vector<8xf32> to vector<8x1xf32>
    %cst_6 = arith.constant 7.680000e+02 : f32
    %8 = vector.broadcast %cst_6 : f32 to vector<8x1xf32>
    %9 = arith.divf %7, %8 : vector<8x1xf32>
    %10 = vector.broadcast %9 : vector<8x1xf32> to vector<8x768xf32>
    %11 = arith.subf %5, %10 : vector<8x768xf32>
    %12 = arith.mulf %11, %11 : vector<8x768xf32>
    %cst_7 = arith.constant dense<0.000000e+00> : vector<8xf32>
    %13 = vector.multi_reduction <add>, %12, %cst_7 [1] : vector<8x768xf32> to vector<8xf32>
    %14 = vector.shape_cast %13 : vector<8xf32> to vector<8x1xf32>
    %cst_8 = arith.constant 7.680000e+02 : f32
    %15 = vector.broadcast %cst_8 : f32 to vector<8x1xf32>
    %16 = arith.divf %14, %15 : vector<8x1xf32>
    %17 = vector.broadcast %9 : vector<8x1xf32> to vector<8x768xf32>
    %18 = arith.subf %5, %17 : vector<8x768xf32>
    %cst_9 = arith.constant 9.99999997E-7 : f32
    %19 = vector.broadcast %cst_9 : f32 to vector<8x1xf32>
    %20 = arith.addf %16, %19 : vector<8x1xf32>
    %21 = math.rsqrt %20 : vector<8x1xf32>
    %22 = vector.broadcast %21 : vector<8x1xf32> to vector<8x768xf32>
    %23 = arith.mulf %18, %22 : vector<8x768xf32>
    %c0_10 = arith.constant 0 : index
    %c0_11 = arith.constant 0 : index
    %24 = vector.load %arg4[%c0_10, %c0_11] : memref<1x768xf32, #tpu.memory_space<vmem>>, vector<1x768xf32>
    %25 = vector.broadcast %24 : vector<1x768xf32> to vector<8x768xf32>
    %26 = arith.mulf %23, %25 : vector<8x768xf32>
    %c0_12 = arith.constant 0 : index
    %c0_13 = arith.constant 0 : index
    %27 = vector.load %arg5[%c0_12, %c0_13] : memref<1x768xf32, #tpu.memory_space<vmem>>, vector<1x768xf32>
    %28 = vector.broadcast %27 : vector<1x768xf32> to vector<8x768xf32>
    %29 = arith.addf %26, %28 : vector<8x768xf32>
    %c0_14 = arith.constant 0 : index
    %c0_15 = arith.constant 0 : index
    %30 = vector.load %arg6[%c0_14, %c0_15] : memref<8x768xf32, #tpu.memory_space<vmem>>, vector<8x768xf32>
    tpu.vector_store %arg6[%c0_14, %c0_15], %29 {strides = array<i32>} : memref<8x768xf32, #tpu.memory_space<vmem>>, vector<8x768xf32>,
    return
  }
  func.func @transform_0(%arg0: i32) -> (i32, i32) {
    %c0_i32 = arith.constant 0 : i32
    %c0_i32_0 = arith.constant 0 : i32
    return %arg0, %c0_i32 : i32, i32
  }
  func.func @transform_1(%arg0: i32) -> (i32, i32) {
    %c0_i32 = arith.constant 0 : i32
    %c0_i32_0 = arith.constant 0 : i32
    %c0_i32_1 = arith.constant 0 : i32
    return %c0_i32, %c0_i32_0 : i32, i32
  }
  func.func @transform_2(%arg0: i32) -> (i32, i32) {
    %c0_i32 = arith.constant 0 : i32
    %c0_i32_0 = arith.constant 0 : i32
    %c0_i32_1 = arith.constant 0 : i32
    return %c0_i32, %c0_i32_0 : i32, i32
  }
  func.func @transform_3(%arg0: i32) -> (i32, i32) {
    %c0_i32 = arith.constant 0 : i32
    %c0_i32_0 = arith.constant 0 : i32
    %c0_i32_1 = arith.constant 0 : i32
    return %c0_i32, %c0_i32_0 : i32, i32
  }
  func.func @transform_4(%arg0: i32) -> (i32, i32) {
    %c0_i32 = arith.constant 0 : i32
    %c0_i32_0 = arith.constant 0 : i32
    %c0_i32_1 = arith.constant 0 : i32
    return %c0_i32, %c0_i32_0 : i32, i32
  }
  func.func @transform_5(%arg0: i32) -> (i32, i32) {
    %c0_i32 = arith.constant 0 : i32
    %c0_i32_0 = arith.constant 0 : i32
    return %arg0, %c0_i32 : i32, i32
  }
}

</mosaic_0001>

<bundles_post_ra>
// kernel: image_encoder_forward.1
= control target key start
LH: loop header
LB: loop body
LE: loop exit
PB: predicated region body
PF: predicated region fallthrough
CT: control target
= control target key end

     0   :  { %s3371_s18 = smov 0   ;;  %s4340_s0 = inlined_call_operand.vmem [shape: bf16[24,768], index: 0, kind: input, shape index: {}]   ;;  %s4341_s1 = inlined_call_operand.vmem [shape: bf16[768,768], index: 1, kind: input, shape index: {}]   ;;  %s4342_s2 = inlined_call_operand.vmem [shape: f32[1,768], index: 2, kind: input, shape index: {}]   ;;  %s4343_s3 = inlined_call_operand.vmem [shape: f32[1,768], index: 3, kind: input, shape index: {}]   ;;  %s4344_s4 = inlined_call_operand.vmem [shape: f32[1,768], index: 4, kind: input, shape index: {}]   ;;  %s4345_s5 = inlined_call_operand.vmem [shape: f32[24,768], index: 5, kind: output, shape index: {}]  }
   0x1 LB: > { %s2552_s19 = sadd.s32 4294967295, %s3339_s18   ;;  %p2556_p0 = scmp.ge.s32.totalorder %s3339_s18, 1  ;;  %s3339_s18 = sphi %s3371_s18, %s15_s18  }
   0x2   : > { %p187_p1 = scmp.lt.s32.totalorder %s3339_s18, 4 }
   0x4   : > { %p188_p2 = pnand %p2556_p0, %p187_p1 }
   0x5   : > { %v2893_v0 = vld [vmem:[%s4341_s1 + $0x4] ss:$24 sps:$4 sm:$0xff] (!%p188_p2)   ;;  %v2897_v2 = vld [vmem:[%s4341_s1] ss:$24 sps:$4 sm:$0xff] (!%p188_p2)   ;;  %v2899_v4 = vld [vmem:[%s4341_s1 + $0x34] ss:$24 sps:$4 sm:$0xff] (!%p188_p2)  }
   0x6   : > { %191 = sbr.rel (%p188_p2) target bundleno = 869 (0x365), region = 40  ;;  %v2895_v1 = vld [vmem:[%s4341_s1 + $0x304] ss:$24 sps:$4 sm:$0xff] (!%p188_p2)   ;;  %2009 = vmatprep.subr.bf16.mxu1 (!%p188_p2), %v2893_v0  ;;  %v2898_v3 = vld [vmem:[%s4341_s1 + $0x300] ss:$24 sps:$4 sm:$0xff] (!%p188_p2)   ;;  %p215_p3 = scmp.lt.s32.totalorder (!%p188_p2), %s2552_s19, 2 }
   0x7   : > { %2050 = vmatprep.subr.bf16.mxu0 (!%p188_p2), %v2895_v1  ;;  %2010 = vmatpush1.bf16.msra.mxu1 (!%p188_p2), %v2897_v2  ;;  %v2901_v5 = vld [vmem:[%s4341_s1 + $0x334] ss:$24 sps:$4 sm:$0xff] (!%p188_p2)   ;;  %v2903_v6 = vld [vmem:[%s4341_s1 + $0x30] ss:$24 sps:$4 sm:$0xff] (!%p188_p2)   ;;  %v2905_v8 = vld [vmem:[%s4341_s1 + $0x64] ss:$24 sps:$4 sm:$0xff] (!%p188_p2)  }
   0x8   : > { %2051 = vmatpush1.bf16.msra.mxu0 (!%p188_p2), %v2898_v3  ;;  %2011 = vmatprep.subr.bf16.mxu1 (!%p188_p2), %v2899_v4  ;;  %v2904_v7 = vld [vmem:[%s4341_s1 + $0x330] ss:$24 sps:$4 sm:$0xff] (!%p188_p2)   ;;  %v2907_v9 = vld [vmem:[%s4341_s1 + $0x364] ss:$24 sps:$4 sm:$0xff] (!%p188_p2)   ;;  %v2909_v10 = vld [vmem:[%s4341_s1 + $0x60] ss:$24 sps:$4 sm:$0xff] (!%p188_p2)  }
   0x9   : > { %2052 = vmatprep.subr.bf16.mxu0 (!%p188_p2), %v2901_v5  ;;  %v2910_v11 = vld [vmem:[%s4341_s1 + $0x360] ss:$24 sps:$4 sm:$0xff] (!%p188_p2)   ;;  %v2911_v12 = vld [vmem:[%s4341_s1 + $0x94] ss:$24 sps:$4 sm:$0xff] (!%p188_p2)   ;;  %v2915_v14 = vld [vmem:[%s4341_s1 + $0x90] ss:$24 sps:$4 sm:$0xff] (!%p188_p2)  }
   0xa   : > { %v2913_v13 = vld [vmem:[%s4341_s1 + $0x394] ss:$24 sps:$4 sm:$0xff] (!%p188_p2)   ;;  %v2916_v15 = vld [vmem:[%s4341_s1 + $0x390] ss:$24 sps:$4 sm:$0xff] (!%p188_p2)   ;;  %v2917_v16 = vld [vmem:[%s4341_s1 + $0xc4] ss:$24 sps:$4 sm:$0xff] (!%p188_p2)  }
   0xb   : > { %2012 = vmatpush1.bf16.msra.mxu1 (!%p188_p2), %v2903_v6  ;;  %v2919_v17 = vld [vmem:[%s4341_s1 + $0x3c4] ss:$24 sps:$4 sm:$0xff] (!%p188_p2)   ;;  %v2921_v18 = vld [vmem:[%s4341_s1 + $0xc0] ss:$24 sps:$4 sm:$0xff] (!%p188_p2)   ;;  %v2923_v20 = vld [vmem:[%s4341_s1 + $0xf4] ss:$24 sps:$4 sm:$0xff] (!%p188_p2)  }
   0xc   : > { %2053 = vmatpush1.bf16.msra.mxu0 (!%p188_p2), %v2904_v7  ;;  %2013 = vmatprep.subr.bf16.mxu1 (!%p188_p2), %v2905_v8  ;;  %v2922_v19 = vld [vmem:[%s4341_s1 + $0x3c0] ss:$24 sps:$4 sm:$0xff] (!%p188_p2)   ;;  %v2925_v21 = vld [vmem:[%s4341_s1 + $0x3f4] ss:$24 sps:$4 sm:$0xff] (!%p188_p2)   ;;  %v2927_v22 = vld [vmem:[%s4341_s1 + $0xf0] ss:$24 sps:$4 sm:$0xff] (!%p188_p2)  }
   0xd   : > { %2054 = vmatprep.subr.bf16.mxu0 %v2907_v9  ;;  %v2928_v23 = vld [vmem:[%s4341_s1 + $0x3f0] ss:$24 sps:$4 sm:$0xff]   ;;  %v2929_v24 = vld [vmem:[%s4341_s1 + $0x124] ss:$24 sps:$4 sm:$0xff]   ;;  %v2933_v26 = vld [vmem:[%s4341_s1 + $0x120] ss:$24 sps:$4 sm:$0xff]  }
   0xe   : > { %v2931_v25 = vld [vmem:[%s4341_s1 + $0x424] ss:$24 sps:$4 sm:$0xff]   ;;  %v2934_v27 = vld [vmem:[%s4341_s1 + $0x420] ss:$24 sps:$4 sm:$0xff]   ;;  %v2935_v28 = vld [vmem:[%s4341_s1 + $0x154] ss:$24 sps:$4 sm:$0xff]  }
   0xf   : > { %2014 = vmatpush1.bf16.msra.mxu1 %v2909_v10  ;;  %v2937_v29 = vld [vmem:[%s4341_s1 + $0x454] ss:$24 sps:$4 sm:$0xff]   ;;  %v2939_v30 = vld [vmem:[%s4341_s1 + $0x150] ss:$24 sps:$4 sm:$0xff]   ;;  %v2941_v32 = vld [vmem:[%s4341_s1 + $0x184] ss:$24 sps:$4 sm:$0xff]  }
  0x10   : > { %2055 = vmatpush1.bf16.msra.mxu0 %v2910_v11  ;;  %2015 = vmatprep.subr.bf16.mxu1 %v2911_v12  ;;  %v2940_v31 = vld [vmem:[%s4341_s1 + $0x450] ss:$24 sps:$4 sm:$0xff]   ;;  %v2943_v33 = vld [vmem:[%s4341_s1 + $0x484] ss:$24 sps:$4 sm:$0xff]   ;;  %v2945_v34 = vld [vmem:[%s4341_s1 + $0x180] ss:$24 sps:$4 sm:$0xff]  }
  0x11   : > { %2056 = vmatprep.subr.bf16.mxu0 %v2913_v13  ;;  %v2946_v35 = vld [vmem:[%s4341_s1 + $0x480] ss:$24 sps:$4 sm:$0xff]   ;;  %s4347_s19 = smov (!%p215_p3, %s2552_s19), 2  ;;  %v2947_v36 = vld [vmem:[%s4341_s1 + $0x1b4] ss:$24 sps:$4 sm:$0xff]  }
  0x12   : > { %v2949_v37 = vld [vmem:[%s4341_s1 + $0x4b4] ss:$24 sps:$4 sm:$0xff]   ;;  %v2951_v38 = vld [vmem:[%s4341_s1 + $0x1b0] ss:$24 sps:$4 sm:$0xff]   ;;  %s2883_s29 = smul.u32 24, %s4347_s19 }
  0x13   : > { %2016 = vmatpush1.bf16.msra.mxu1 %v2915_v14  ;;  %v2952_v39 = vld [vmem:[%s4341_s1 + $0x4b0] ss:$24 sps:$4 sm:$0xff]   ;;  %v2953_v40 = vld [vmem:[%s4341_s1 + $0x1e4] ss:$24 sps:$4 sm:$0xff]   ;;  %v2957_v42 = vld [vmem:[%s4341_s1 + $0x1e0] ss:$24 sps:$4 sm:$0xff]  }
  0x14   : > { %2057 = vmatpush1.bf16.msra.mxu0 %v2916_v15  ;;  %2017 = vmatprep.subr.bf16.mxu1 %v2917_v16  ;;  %v2955_v41 = vld [vmem:[%s4341_s1 + $0x4e4] ss:$24 sps:$4 sm:$0xff]   ;;  %v2958_v43 = vld [vmem:[%s4341_s1 + $0x4e0] ss:$24 sps:$4 sm:$0xff]   ;;  %s3521_s17 = scalar_lea.vmem %s4340_s0, %s2883_s29  ;;  %v2959_v44 = vld [vmem:[%s4341_s1 + $0x214] ss:$24 sps:$4 sm:$0xff]  }
  0x15   : > { %2058 = vmatprep.subr.bf16.mxu0 %v2919_v17  ;;  %v2961_v45 = vld [vmem:[%s4341_s1 + $0x514] ss:$24 sps:$4 sm:$0xff]   ;;  %v225_v46 = vld [vmem:[%s3521_s17] sm:$0xff]  ;;  %v2963_v49 = vld [vmem:[%s4341_s1 + $0x210] ss:$24 sps:$4 sm:$0xff]   ;;  %s2884_s9 = smul.u32 48, %s4347_s19 }
  0x16   : > { %v3530_v47 = vcombine.high %v225_v46, %v225_v46  ;;  %v226_v48 = vld [vmem:[%s3521_s17 + $0x8] sm:$0xff]  ;;  %v2965_v52 = vld [vmem:[%s4341_s1 + $0x244] ss:$24 sps:$4 sm:$0xff]   ;;  %v2969_v54 = vld [vmem:[%s4341_s1 + $0x240] ss:$24 sps:$4 sm:$0xff]   ;;  %v3597_v6 = vcombine.low %v225_v46, %v225_v46 }
  0x17   : > { %2018 = vmatpush1.bf16.msra.mxu1 %v2921_v18  ;;  %v2964_v50 = vld [vmem:[%s4341_s1 + $0x510] ss:$24 sps:$4 sm:$0xff]   ;;  %v3539_v51 = vcombine.high %v226_v48, %v226_v48  ;;  %v2967_v53 = vld [vmem:[%s4341_s1 + $0x544] ss:$24 sps:$4 sm:$0xff]   ;;  %v2970_v55 = vld [vmem:[%s4341_s1 + $0x540] ss:$24 sps:$4 sm:$0xff]   ;;  %v3599_v7 = vcombine.low %v226_v48, %v226_v48  ;;  %s224_s11 = scalar_lea.vmem %s4345_s5, %s2884_s9 }
  0x18   : > { %2059 = vmatpush1.bf16.msra.mxu0 %v2922_v19  ;;  %2019 = vmatprep.subr.bf16.mxu1 %v2923_v20  ;;  %v2971_v56 = vld [vmem:[%s4341_s1 + $0x274] ss:$24 sps:$4 sm:$0xff]   ;;  %v2975_v58 = vld [vmem:[%s4341_s1 + $0x270] ss:$24 sps:$4 sm:$0xff]   ;;  %v2977_v60 = vld [vmem:[%s4341_s1 + $0x2a4] ss:$24 sps:$4 sm:$0xff]  }
  0x19   : > { %2060 = vmatprep.subr.bf16.mxu0 %v2925_v21  ;;  %2041 = vmatprep.mubr.bf16.mxu1 %v3530_v47  ;;  %v2973_v57 = vld [vmem:[%s4341_s1 + $0x574] ss:$24 sps:$4 sm:$0xff]   ;;  %v2976_v59 = vld [vmem:[%s4341_s1 + $0x570] ss:$24 sps:$4 sm:$0xff]   ;;  %v2979_v61 = vld [vmem:[%s4341_s1 + $0x5a4] ss:$24 sps:$4 sm:$0xff]  }
  0x1a   : > { %2082 = vmatprep.mubr.bf16.mxu0 %v3539_v51  ;;  %v2981_v62 = vld [vmem:[%s4341_s1 + $0x2a0] ss:$24 sps:$4 sm:$0xff]   ;;  %v2983_v0 = vld [vmem:[%s4341_s1 + $0x2d4] ss:$24 sps:$4 sm:$0xff]   ;;  %v2987_v2 = vld [vmem:[%s4341_s1 + $0x2d0] ss:$24 sps:$4 sm:$0xff]  }
  0x1b   : > { %2020 = vmatpush1.bf16.msra.mxu1 %v2927_v22  ;;  %v2982_v63 = vld [vmem:[%s4341_s1 + $0x5a0] ss:$24 sps:$4 sm:$0xff]   ;;  %v2985_v1 = vld [vmem:[%s4341_s1 + $0x5d4] ss:$24 sps:$4 sm:$0xff]   ;;  %v2988_v3 = vld [vmem:[%s4341_s1 + $0x5d0] ss:$24 sps:$4 sm:$0xff]  }
  0x1c   : > { %2061 = vmatpush1.bf16.msra.mxu0 %v2928_v23  ;;  %2021 = vmatprep.subr.bf16.mxu1 %v2929_v24  ;;  %v2993_v4 = vld [vmem:[%s4341_s1 + $0x604] ss:$24 sps:$4 sm:$0xff]   ;;  %v2991_v8 = vld [vmem:[%s4341_s1 + $0x600] ss:$24 sps:$4 sm:$0xff]   ;;  %v3001_v10 = vld [vmem:[%s4341_s1 + $0x634] ss:$24 sps:$4 sm:$0xff]  }
  0x1d   : > { %2062 = vmatprep.subr.bf16.mxu0 %v2931_v25  ;;  %v2996_v5 = vld [vmem:[%s4341_s1 + $0xc] ss:$24 sps:$4 sm:$0xff]   ;;  %v2994_v9 = vld [vmem:[%s4341_s1 + $0x8] ss:$24 sps:$4 sm:$0xff]   ;;  %v3004_v11 = vld [vmem:[%s4341_s1 + $0x3c] ss:$24 sps:$4 sm:$0xff]  }
  0x1e   : > { %v2999_v12 = vld [vmem:[%s4341_s1 + $0x630] ss:$24 sps:$4 sm:$0xff]   ;;  %v3007_v14 = vld [vmem:[%s4341_s1 + $0x664] ss:$24 sps:$4 sm:$0xff]   ;;  %v3005_v16 = vld [vmem:[%s4341_s1 + $0x660] ss:$24 sps:$4 sm:$0xff]  }
  0x1f   : > { %2022 = vmatpush1.bf16.msra.mxu1 %v2933_v26  ;;  %v3002_v13 = vld [vmem:[%s4341_s1 + $0x38] ss:$24 sps:$4 sm:$0xff]   ;;  %v3010_v15 = vld [vmem:[%s4341_s1 + $0x6c] ss:$24 sps:$4 sm:$0xff]   ;;  %v3008_v17 = vld [vmem:[%s4341_s1 + $0x68] ss:$24 sps:$4 sm:$0xff]  }
  0x20   : > { %2063 = vmatpush1.bf16.msra.mxu0 %v2934_v27  ;;  %2023 = vmatprep.subr.bf16.mxu1 %v2935_v28  ;;  %v3013_v18 = vld [vmem:[%s4341_s1 + $0x694] ss:$24 sps:$4 sm:$0xff]   ;;  %v3011_v20 = vld [vmem:[%s4341_s1 + $0x690] ss:$24 sps:$4 sm:$0xff]   ;;  %v3019_v22 = vld [vmem:[%s4341_s1 + $0x6c4] ss:$24 sps:$4 sm:$0xff]  }
  0x21   : > { %2064 = vmatprep.subr.bf16.mxu0 %v2937_v29  ;;  %v3016_v19 = vld [vmem:[%s4341_s1 + $0x9c] ss:$24 sps:$4 sm:$0xff]   ;;  %v3014_v21 = vld [vmem:[%s4341_s1 + $0x98] ss:$24 sps:$4 sm:$0xff]   ;;  %v3022_v23 = vld [vmem:[%s4341_s1 + $0xcc] ss:$24 sps:$4 sm:$0xff]  }
  0x22   : > { %v3017_v24 = vld [vmem:[%s4341_s1 + $0x6c0] ss:$24 sps:$4 sm:$0xff]   ;;  %v3025_v26 = vld [vmem:[%s4341_s1 + $0x6f4] ss:$24 sps:$4 sm:$0xff]   ;;  %v3023_v28 = vld [vmem:[%s4341_s1 + $0x6f0] ss:$24 sps:$4 sm:$0xff]  }
  0x23   : > { %2024 = vmatpush1.bf16.msra.mxu1 %v2939_v30  ;;  %v3020_v25 = vld [vmem:[%s4341_s1 + $0xc8] ss:$24 sps:$4 sm:$0xff]   ;;  %v3028_v27 = vld [vmem:[%s4341_s1 + $0xfc] ss:$24 sps:$4 sm:$0xff]   ;;  %v3026_v29 = vld [vmem:[%s4341_s1 + $0xf8] ss:$24 sps:$4 sm:$0xff]  }
  0x24   : > { %2065 = vmatpush1.bf16.msra.mxu0 %v2940_v31  ;;  %2025 = vmatprep.subr.bf16.mxu1 %v2941_v32  ;;  %v3031_v30 = vld [vmem:[%s4341_s1 + $0x724] ss:$24 sps:$4 sm:$0xff]   ;;  %v3677_v32 = vld [vmem:[%s3521_s17 + $0x10] sm:$0xff] }
  0x25   : > { %2066 = vmatprep.subr.bf16.mxu0 %v2943_v33  ;;  %v3034_v31 = vld [vmem:[%s4341_s1 + $0x12c] ss:$24 sps:$4 sm:$0xff]   ;;  %v3029_v33 = vld [vmem:[%s4341_s1 + $0x720] ss:$24 sps:$4 sm:$0xff]   ;;  %v3047_v46 = vld [vmem:[%s4341_s1 + $0x7b0] ss:$24 sps:$4 sm:$0xff]  }
  0x26   : > { %v3050_v48 = vld [vmem:[%s4341_s1 + $0x1b8] ss:$24 sps:$4 sm:$0xff]  }
  0x27   : > { %2026 = vmatpush1.bf16.msra.mxu1 %v2945_v34  ;;  %v3684_v34 = vcombine.high %v3677_v32, %v3677_v32 }
  0x28   : > { %2067 = vmatpush1.bf16.msra.mxu0 %v2946_v35  ;;  %2027 = vmatprep.subr.bf16.mxu1 %v2947_v36  ;;  %v3032_v35 = vld [vmem:[%s4341_s1 + $0x128] ss:$24 sps:$4 sm:$0xff]   ;;  %v3037_v36 = vld [vmem:[%s4341_s1 + $0x754] ss:$24 sps:$4 sm:$0xff]  }
  0x29   : > { %2068 = vmatprep.subr.bf16.mxu0 %v2949_v37  ;;  %v3040_v37 = vld [vmem:[%s4341_s1 + $0x15c] ss:$24 sps:$4 sm:$0xff]  }
  0x2b   : > { %2028 = vmatpush1.bf16.msra.mxu1 %v2951_v38  ;;  %v3035_v38 = vld [vmem:[%s4341_s1 + $0x750] ss:$24 sps:$4 sm:$0xff]  }
  0x2c   : > { %2069 = vmatpush1.bf16.msra.mxu0 %v2952_v39  ;;  %2029 = vmatprep.subr.bf16.mxu1 %v2953_v40  ;;  %v3038_v39 = vld [vmem:[%s4341_s1 + $0x158] ss:$24 sps:$4 sm:$0xff]   ;;  %v3043_v40 = vld [vmem:[%s4341_s1 + $0x784] ss:$24 sps:$4 sm:$0xff]  }
  0x2d   : > { %2070 = vmatprep.subr.bf16.mxu0 %v2955_v41  ;;  %v3046_v41 = vld [vmem:[%s4341_s1 + $0x18c] ss:$24 sps:$4 sm:$0xff]  }
  0x2f   : > { %2030 = vmatpush1.bf16.msra.mxu1 %v2957_v42  ;;  %v3041_v42 = vld [vmem:[%s4341_s1 + $0x780] ss:$24 sps:$4 sm:$0xff]  }
  0x30   : > { %2071 = vmatpush1.bf16.msra.mxu0 %v2958_v43  ;;  %2031 = vmatprep.subr.bf16.mxu1 %v2959_v44  ;;  %v3044_v43 = vld [vmem:[%s4341_s1 + $0x188] ss:$24 sps:$4 sm:$0xff]   ;;  %v3049_v44 = vld [vmem:[%s4341_s1 + $0x7b4] ss:$24 sps:$4 sm:$0xff]  }
  0x31   : > { %2072 = vmatprep.subr.bf16.mxu0 %v2961_v45  ;;  %v3052_v45 = vld [vmem:[%s4341_s1 + $0x1bc] ss:$24 sps:$4 sm:$0xff]  }
  0x33   : > { %2032 = vmatpush1.bf16.msra.mxu1 %v2963_v49  ;;  %v3055_v49 = vld [vmem:[%s4341_s1 + $0x7e4] ss:$24 sps:$4 sm:$0xff]  }
  0x34   : > { %2073 = vmatpush1.bf16.msra.mxu0 %v2964_v50  ;;  %2033 = vmatprep.subr.bf16.mxu1 %v2965_v52  ;;  %v3058_v50 = vld [vmem:[%s4341_s1 + $0x1ec] ss:$24 sps:$4 sm:$0xff]   ;;  %v3053_v52 = vld [vmem:[%s4341_s1 + $0x7e0] ss:$24 sps:$4 sm:$0xff]  }
  0x35   : > { %2074 = vmatprep.subr.bf16.mxu0 %v2967_v53  ;;  %v3056_v53 = vld [vmem:[%s4341_s1 + $0x1e8] ss:$24 sps:$4 sm:$0xff]  }
  0x37   : > { %2034 = vmatpush1.bf16.msra.mxu1 %v2969_v54  ;;  %v3061_v54 = vld [vmem:[%s4341_s1 + $0x814] ss:$24 sps:$4 sm:$0xff]  }
  0x38   : > { %2075 = vmatpush1.bf16.msra.mxu0 %v2970_v55  ;;  %2035 = vmatprep.subr.bf16.mxu1 %v2971_v56  ;;  %v3064_v55 = vld [vmem:[%s4341_s1 + $0x21c] ss:$24 sps:$4 sm:$0xff]   ;;  %v3059_v56 = vld [vmem:[%s4341_s1 + $0x810] ss:$24 sps:$4 sm:$0xff]  }
  0x39   : > { %2076 = vmatprep.subr.bf16.mxu0 %v2973_v57  ;;  %v3062_v57 = vld [vmem:[%s4341_s1 + $0x218] ss:$24 sps:$4 sm:$0xff]  }
  0x3b   : > { %2036 = vmatpush1.bf16.msra.mxu1 %v2975_v58  ;;  %v3067_v58 = vld [vmem:[%s4341_s1 + $0x844] ss:$24 sps:$4 sm:$0xff]  }
  0x3c   : > { %2077 = vmatpush1.bf16.msra.mxu0 %v2976_v59  ;;  %2037 = vmatprep.subr.bf16.mxu1 %v2977_v60  ;;  %v3070_v59 = vld [vmem:[%s4341_s1 + $0x24c] ss:$24 sps:$4 sm:$0xff]   ;;  %v3065_v60 = vld [vmem:[%s4341_s1 + $0x840] ss:$24 sps:$4 sm:$0xff]  }
  0x3d   : > { %2078 = vmatprep.subr.bf16.mxu0 %v2979_v61  ;;  %v3068_v61 = vld [vmem:[%s4341_s1 + $0x248] ss:$24 sps:$4 sm:$0xff]  }
  0x3f   : > { %2038 = vmatpush1.bf16.msra.mxu1 %v2981_v62  ;;  %v3073_v62 = vld [vmem:[%s4341_s1 + $0x874] ss:$24 sps:$4 sm:$0xff]  }
  0x40   : > { %2079 = vmatpush1.bf16.msra.mxu0 %v2982_v63  ;;  %2039 = vmatprep.subr.bf16.mxu1 %v2983_v0  ;;  %v3076_v63 = vld [vmem:[%s4341_s1 + $0x27c] ss:$24 sps:$4 sm:$0xff]   ;;  %v3071_v0 = vld [vmem:[%s4341_s1 + $0x870] ss:$24 sps:$4 sm:$0xff]  }
  0x41   : > { %2080 = vmatprep.subr.bf16.mxu0 %v2985_v1  ;;  %v3074_v1 = vld [vmem:[%s4341_s1 + $0x278] ss:$24 sps:$4 sm:$0xff]  }
  0x43   : > { %2040 = vmatpush1.bf16.msra.mxu1 %v2987_v2  ;;  %v3079_v2 = vld [vmem:[%s4341_s1 + $0x8a4] ss:$24 sps:$4 sm:$0xff]  }
  0x44   : > { %2081 = vmatpush1.bf16.msra.mxu0 %v2988_v3  ;;  %2132 = vmatprep.subr.bf16.mxu1 %v2996_v5  ;;  %v3082_v3 = vld [vmem:[%s4341_s1 + $0x2ac] ss:$24 sps:$4 sm:$0xff]   ;;  %v3080_v5 = vld [vmem:[%s4341_s1 + $0x2a8] ss:$24 sps:$4 sm:$0xff]  }
  0x45   : > { %2091 = vmatprep.subr.bf16.mxu0 %v2993_v4  ;;  %v3077_v4 = vld [vmem:[%s4341_s1 + $0x8a0] ss:$24 sps:$4 sm:$0xff]  }
  0x46   : > { %2042 = vmatmul.mubr.bf16.vlgmr.msra.gmra.mrb[0].mxu1 %v3597_v6 }
  0x47   : > { %2083 = vmatmul.mubr.bf16.vlgmr.msra.gmra.mrb[0].mxu0 %v3599_v7  ;;  %2133 = vmatpush1.bf16.msra.mxu1 %v2994_v9  ;;  %v3088_v9 = vld [vmem:[%s4341_s1 + $0x2dc] ss:$24 sps:$4 sm:$0xff]  }
  0x48   : > { %2092 = vmatpush1.bf16.msra.mxu0 %v2991_v8  ;;  %2134 = vmatprep.subr.bf16.mxu1 %v3004_v11  ;;  %v3085_v8 = vld [vmem:[%s4341_s1 + $0x8d4] ss:$24 sps:$4 sm:$0xff]   ;;  %v3086_v11 = vld [vmem:[%s4341_s1 + $0x2d8] ss:$24 sps:$4 sm:$0xff]  }
  0x49   : > { %2093 = vmatprep.subr.bf16.mxu0 %v3001_v10  ;;  %2164 = vmatprep.mubr.bf16.mxu1 %v3530_v47  ;;  %v3083_v10 = vld [vmem:[%s4341_s1 + $0x8d0] ss:$24 sps:$4 sm:$0xff]  }
  0x4a   : > { %2123 = vmatprep.mubr.bf16.mxu0 %v3684_v34 }
  0x4b   : > { %2135 = vmatpush1.bf16.msra.mxu1 %v3002_v13  ;;  %v3096_v13 = vld [vmem:[%s4341_s1 + $0x14] ss:$24 sps:$4 sm:$0xff]  }
  0x4c   : > { %2094 = vmatpush1.bf16.msra.mxu0 %v2999_v12  ;;  %2136 = vmatprep.subr.bf16.mxu1 %v3010_v15  ;;  %v3093_v12 = vld [vmem:[%s4341_s1 + $0x30c] ss:$24 sps:$4 sm:$0xff]   ;;  %v3091_v15 = vld [vmem:[%s4341_s1 + $0x308] ss:$24 sps:$4 sm:$0xff]  }
  0x4d   : > { %2095 = vmatprep.subr.bf16.mxu0 %v3007_v14  ;;  %v3806_v14 = vcombine.low %v3677_v32, %v3677_v32  ;;  %v3123_v32 = vld [vmem:[%s4341_s1 + $0x3fc] ss:$24 sps:$4 sm:$0xff]  }
  0x4f   : > { %2137 = vmatpush1.bf16.msra.mxu1 %v3008_v17  ;;  %v3099_v17 = vld [vmem:[%s4341_s1 + $0x33c] ss:$24 sps:$4 sm:$0xff]  }
  0x50   : > { %2096 = vmatpush1.bf16.msra.mxu0 %v3005_v16  ;;  %2138 = vmatprep.subr.bf16.mxu1 %v3016_v19  ;;  %v3094_v16 = vld [vmem:[%s4341_s1 + $0x10] ss:$24 sps:$4 sm:$0xff]  }
  0x51   : > { %2097 = vmatprep.subr.bf16.mxu0 %v3013_v18  ;;  %v3102_v18 = vld [vmem:[%s4341_s1 + $0x44] ss:$24 sps:$4 sm:$0xff]   ;;  %v3097_v19 = vld [vmem:[%s4341_s1 + $0x338] ss:$24 sps:$4 sm:$0xff]  }
  0x53   : > { %2139 = vmatpush1.bf16.msra.mxu1 %v3014_v21  ;;  %v3105_v21 = vld [vmem:[%s4341_s1 + $0x36c] ss:$24 sps:$4 sm:$0xff]  }
  0x54   : > { %2098 = vmatpush1.bf16.msra.mxu0 %v3011_v20  ;;  %2140 = vmatprep.subr.bf16.mxu1 %v3022_v23  ;;  %v3100_v20 = vld [vmem:[%s4341_s1 + $0x40] ss:$24 sps:$4 sm:$0xff]  }
  0x55   : > { %2099 = vmatprep.subr.bf16.mxu0 %v3019_v22  ;;  %v3108_v22 = vld [vmem:[%s4341_s1 + $0x74] ss:$24 sps:$4 sm:$0xff]   ;;  %v3103_v23 = vld [vmem:[%s4341_s1 + $0x368] ss:$24 sps:$4 sm:$0xff]  }
  0x57   : > { %2141 = vmatpush1.bf16.msra.mxu1 %v3020_v25  ;;  %v3111_v25 = vld [vmem:[%s4341_s1 + $0x39c] ss:$24 sps:$4 sm:$0xff]  }
  0x58   : > { %2100 = vmatpush1.bf16.msra.mxu0 %v3017_v24  ;;  %2142 = vmatprep.subr.bf16.mxu1 %v3028_v27  ;;  %v3106_v24 = vld [vmem:[%s4341_s1 + $0x70] ss:$24 sps:$4 sm:$0xff]   ;;  %v3112_v27 = vld [vmem:[%s4341_s1 + $0xa0] ss:$24 sps:$4 sm:$0xff]  }
  0x59   : > { %2101 = vmatprep.subr.bf16.mxu0 %v3025_v26  ;;  %v3109_v26 = vld [vmem:[%s4341_s1 + $0x398] ss:$24 sps:$4 sm:$0xff]  }
  0x5b   : > { %2143 = vmatpush1.bf16.msra.mxu1 %v3026_v29  ;;  %v3120_v29 = vld [vmem:[%s4341_s1 + $0xd4] ss:$24 sps:$4 sm:$0xff]  }
  0x5c   : > { %2102 = vmatpush1.bf16.msra.mxu0 %v3023_v28  ;;  %2144 = vmatprep.subr.bf16.mxu1 %v3034_v31  ;;  %v3117_v28 = vld [vmem:[%s4341_s1 + $0x3cc] ss:$24 sps:$4 sm:$0xff]   ;;  %v3118_v31 = vld [vmem:[%s4341_s1 + $0xd0] ss:$24 sps:$4 sm:$0xff]  }
  0x5d   : > { %2103 = vmatprep.subr.bf16.mxu0 %v3031_v30  ;;  %v3115_v30 = vld [vmem:[%s4341_s1 + $0x3c8] ss:$24 sps:$4 sm:$0xff]  }
  0x5f   : > { %2145 = vmatpush1.bf16.msra.mxu1 %v3032_v35  ;;  %v3121_v35 = vld [vmem:[%s4341_s1 + $0x3f8] ss:$24 sps:$4 sm:$0xff]  }
  0x60   : > { %2104 = vmatpush1.bf16.msra.mxu0 %v3029_v33  ;;  %2146 = vmatprep.subr.bf16.mxu1 %v3040_v37  ;;  %v3126_v33 = vld [vmem:[%s4341_s1 + $0x104] ss:$24 sps:$4 sm:$0xff]  }
  0x61   : > { %2105 = vmatprep.subr.bf16.mxu0 %v3037_v36  ;;  %v3124_v36 = vld [vmem:[%s4341_s1 + $0x100] ss:$24 sps:$4 sm:$0xff]   ;;  %v3129_v37 = vld [vmem:[%s4341_s1 + $0x42c] ss:$24 sps:$4 sm:$0xff]  }
  0x63   : > { %2147 = vmatpush1.bf16.msra.mxu1 %v3038_v39  ;;  %v3127_v39 = vld [vmem:[%s4341_s1 + $0x428] ss:$24 sps:$4 sm:$0xff]  }
  0x64   : > { %2106 = vmatpush1.bf16.msra.mxu0 %v3035_v38  ;;  %2148 = vmatprep.subr.bf16.mxu1 %v3046_v41  ;;  %v3132_v38 = vld [vmem:[%s4341_s1 + $0x134] ss:$24 sps:$4 sm:$0xff]  }
  0x65   : > { %2107 = vmatprep.subr.bf16.mxu0 %v3043_v40  ;;  %v3130_v40 = vld [vmem:[%s4341_s1 + $0x130] ss:$24 sps:$4 sm:$0xff]   ;;  %v3135_v41 = vld [vmem:[%s4341_s1 + $0x45c] ss:$24 sps:$4 sm:$0xff]  }
  0x67   : > { %2149 = vmatpush1.bf16.msra.mxu1 %v3044_v43  ;;  %v3133_v43 = vld [vmem:[%s4341_s1 + $0x458] ss:$24 sps:$4 sm:$0xff]  }
  0x68   : > { %2108 = vmatpush1.bf16.msra.mxu0 %v3041_v42  ;;  %2150 = vmatprep.subr.bf16.mxu1 %v3052_v45  ;;  %v3138_v42 = vld [vmem:[%s4341_s1 + $0x164] ss:$24 sps:$4 sm:$0xff]  }
  0x69   : > { %2109 = vmatprep.subr.bf16.mxu0 %v3049_v44  ;;  %v3136_v44 = vld [vmem:[%s4341_s1 + $0x160] ss:$24 sps:$4 sm:$0xff]   ;;  %v3141_v45 = vld [vmem:[%s4341_s1 + $0x48c] ss:$24 sps:$4 sm:$0xff]  }
  0x6b   : > { %2151 = vmatpush1.bf16.msra.mxu1 %v3050_v48  ;;  %v3139_v48 = vld [vmem:[%s4341_s1 + $0x488] ss:$24 sps:$4 sm:$0xff]  }
  0x6c   : > { %2110 = vmatpush1.bf16.msra.mxu0 %v3047_v46  ;;  %2152 = vmatprep.subr.bf16.mxu1 %v3058_v50  ;;  %v3144_v46 = vld [vmem:[%s4341_s1 + $0x194] ss:$24 sps:$4 sm:$0xff]  }
  0x6d   : > { %2111 = vmatprep.subr.bf16.mxu0 %v3055_v49  ;;  %v3142_v49 = vld [vmem:[%s4341_s1 + $0x190] ss:$24 sps:$4 sm:$0xff]   ;;  %v3147_v50 = vld [vmem:[%s4341_s1 + $0x4bc] ss:$24 sps:$4 sm:$0xff]  }
  0x6f   : > { %2153 = vmatpush1.bf16.msra.mxu1 %v3056_v53  ;;  %v3145_v53 = vld [vmem:[%s4341_s1 + $0x4b8] ss:$24 sps:$4 sm:$0xff]  }
  0x70   : > { %2112 = vmatpush1.bf16.msra.mxu0 %v3053_v52  ;;  %2154 = vmatprep.subr.bf16.mxu1 %v3064_v55  ;;  %v3150_v52 = vld [vmem:[%s4341_s1 + $0x1c4] ss:$24 sps:$4 sm:$0xff]  }
  0x71   : > { %2113 = vmatprep.subr.bf16.mxu0 %v3061_v54  ;;  %v3148_v54 = vld [vmem:[%s4341_s1 + $0x1c0] ss:$24 sps:$4 sm:$0xff]   ;;  %v3153_v55 = vld [vmem:[%s4341_s1 + $0x4ec] ss:$24 sps:$4 sm:$0xff]  }
  0x73   : > { %2155 = vmatpush1.bf16.msra.mxu1 %v3062_v57  ;;  %v3151_v57 = vld [vmem:[%s4341_s1 + $0x4e8] ss:$24 sps:$4 sm:$0xff]  }
  0x74   : > { %2114 = vmatpush1.bf16.msra.mxu0 %v3059_v56  ;;  %2156 = vmatprep.subr.bf16.mxu1 %v3070_v59  ;;  %v3156_v56 = vld [vmem:[%s4341_s1 + $0x1f4] ss:$24 sps:$4 sm:$0xff]  }
  0x75   : > { %2115 = vmatprep.subr.bf16.mxu0 %v3067_v58  ;;  %v3154_v58 = vld [vmem:[%s4341_s1 + $0x1f0] ss:$24 sps:$4 sm:$0xff]   ;;  %v3159_v59 = vld [vmem:[%s4341_s1 + $0x51c] ss:$24 sps:$4 sm:$0xff]  }
  0x77   : > { %2157 = vmatpush1.bf16.msra.mxu1 %v3068_v61  ;;  %v3157_v61 = vld [vmem:[%s4341_s1 + $0x518] ss:$24 sps:$4 sm:$0xff]  }
  0x78   : > { %2116 = vmatpush1.bf16.msra.mxu0 %v3065_v60  ;;  %2158 = vmatprep.subr.bf16.mxu1 %v3076_v63  ;;  %v3162_v60 = vld [vmem:[%s4341_s1 + $0x224] ss:$24 sps:$4 sm:$0xff]  }
  0x79   : > { %2117 = vmatprep.subr.bf16.mxu0 %v3073_v62  ;;  %v3160_v62 = vld [vmem:[%s4341_s1 + $0x220] ss:$24 sps:$4 sm:$0xff]   ;;  %v3165_v63 = vld [vmem:[%s4341_s1 + $0x54c] ss:$24 sps:$4 sm:$0xff]  }
  0x7b   : > { %2159 = vmatpush1.bf16.msra.mxu1 %v3074_v1  ;;  %v3163_v1 = vld [vmem:[%s4341_s1 + $0x548] ss:$24 sps:$4 sm:$0xff]  }
  0x7c   : > { %2118 = vmatpush1.bf16.msra.mxu0 %v3071_v0  ;;  %2160 = vmatprep.subr.bf16.mxu1 %v3082_v3  ;;  %v3168_v0 = vld [vmem:[%s4341_s1 + $0x254] ss:$24 sps:$4 sm:$0xff]  }
  0x7d   : > { %2119 = vmatprep.subr.bf16.mxu0 %v3079_v2  ;;  %v3166_v2 = vld [vmem:[%s4341_s1 + $0x250] ss:$24 sps:$4 sm:$0xff]   ;;  %v3171_v3 = vld [vmem:[%s4341_s1 + $0x57c] ss:$24 sps:$4 sm:$0xff]  }
  0x7f   : > { %2161 = vmatpush1.bf16.msra.mxu1 %v3080_v5  ;;  %v3169_v5 = vld [vmem:[%s4341_s1 + $0x578] ss:$24 sps:$4 sm:$0xff]  }
  0x80   : > { %2120 = vmatpush1.bf16.msra.mxu0 %v3077_v4  ;;  %2162 = vmatprep.subr.bf16.mxu1 %v3088_v9  ;;  %v3174_v4 = vld [vmem:[%s4341_s1 + $0x284] ss:$24 sps:$4 sm:$0xff]  }
  0x81   : > { %2121 = vmatprep.subr.bf16.mxu0 %v3085_v8  ;;  %v3172_v8 = vld [vmem:[%s4341_s1 + $0x280] ss:$24 sps:$4 sm:$0xff]   ;;  %v3177_v9 = vld [vmem:[%s4341_s1 + $0x5ac] ss:$24 sps:$4 sm:$0xff]  }
  0x83   : > { %2163 = vmatpush1.bf16.msra.mxu1 %v3086_v11  ;;  %v3175_v11 = vld [vmem:[%s4341_s1 + $0x5a8] ss:$24 sps:$4 sm:$0xff]  }
  0x84   : > { %2122 = vmatpush1.bf16.msra.mxu0 %v3083_v10  ;;  %2173 = vmatprep.subr.bf16.mxu1 %v3093_v12  ;;  %v3180_v10 = vld [vmem:[%s4341_s1 + $0x2b4] ss:$24 sps:$4 sm:$0xff]   ;;  %v3178_v12 = vld [vmem:[%s4341_s1 + $0x2b0] ss:$24 sps:$4 sm:$0xff]  }
  0x85   : > { %2255 = vmatprep.subr.bf16.mxu0 %v3096_v13  ;;  %v3183_v13 = vld [vmem:[%s4341_s1 + $0x5dc] ss:$24 sps:$4 sm:$0xff]  }
  0x86   : > { %2165 = vmatmul.mubr.bf16.vlgmr.msra.gmra.mrb[4].mxu1 %v3597_v6 }
  0x87   : > { %2124 = vmatmul.mubr.bf16.vlgmr.msra.gmra.mrb[0].mxu0 %v3806_v14  ;;  %2174 = vmatpush1.bf16.msra.mxu1 %v3091_v15  ;;  %v3186_v15 = vld [vmem:[%s4341_s1 + $0x2e4] ss:$24 sps:$4 sm:$0xff]  }
  0x88   : > { %2256 = vmatpush1.bf16.msra.mxu0 %v3094_v16  ;;  %2175 = vmatprep.subr.bf16.mxu1 %v3099_v17  ;;  %v3181_v16 = vld [vmem:[%s4341_s1 + $0x5d8] ss:$24 sps:$4 sm:$0xff]  }
  0x89   : > { %2257 = vmatprep.subr.bf16.mxu0 %v3102_v18  ;;  %2205 = vmatprep.mubr.bf16.mxu1 %v3539_v51  ;;  %v3184_v17 = vld [vmem:[%s4341_s1 + $0x2e0] ss:$24 sps:$4 sm:$0xff]   ;;  %v3189_v18 = vld [vmem:[%s4341_s1 + $0x60c] ss:$24 sps:$4 sm:$0xff]  }
  0x8a   : > { %2287 = vmatprep.mubr.bf16.mxu0 %v3530_v47  ;;  %v3114_v47 = vld [vmem:[%s4341_s1 + $0xa4] ss:$24 sps:$4 sm:$0xff]  }
  0x8b   : > { %2176 = vmatpush1.bf16.msra.mxu1 %v3097_v19  ;;  %v3192_v19 = vld [vmem:[%s4341_s1 + $0x314] ss:$24 sps:$4 sm:$0xff]  }
  0x8c   : > { %2258 = vmatpush1.bf16.msra.mxu0 %v3100_v20  ;;  %2177 = vmatprep.subr.bf16.mxu1 %v3105_v21  ;;  %v3187_v20 = vld [vmem:[%s4341_s1 + $0x608] ss:$24 sps:$4 sm:$0xff]  }
  0x8d   : > { %2259 = vmatprep.subr.bf16.mxu0 %v3108_v22  ;;  %v3190_v21 = vld [vmem:[%s4341_s1 + $0x310] ss:$24 sps:$4 sm:$0xff]   ;;  %v3195_v22 = vld [vmem:[%s4341_s1 + $0x63c] ss:$24 sps:$4 sm:$0xff]  }
  0x8f   : > { %2178 = vmatpush1.bf16.msra.mxu1 %v3103_v23  ;;  %v3198_v23 = vld [vmem:[%s4341_s1 + $0x344] ss:$24 sps:$4 sm:$0xff]  }
  0x90   : > { %2260 = vmatpush1.bf16.msra.mxu0 %v3106_v24  ;;  %2179 = vmatprep.subr.bf16.mxu1 %v3111_v25  ;;  %v3193_v24 = vld [vmem:[%s4341_s1 + $0x638] ss:$24 sps:$4 sm:$0xff]  }
  0x91   : > { %2261 = vmatprep.subr.bf16.mxu0 %v3114_v47  ;;  %v3196_v25 = vld [vmem:[%s4341_s1 + $0x340] ss:$24 sps:$4 sm:$0xff]   ;;  %v3201_v47 = vld [vmem:[%s4341_s1 + $0x66c] ss:$24 sps:$4 sm:$0xff]  }
  0x93   : > { %2180 = vmatpush1.bf16.msra.mxu1 %v3109_v26  ;;  %v3199_v26 = vld [vmem:[%s4341_s1 + $0x668] ss:$24 sps:$4 sm:$0xff]  }
  0x94   : > { %2262 = vmatpush1.bf16.msra.mxu0 %v3112_v27  ;;  %2181 = vmatprep.subr.bf16.mxu1 %v3117_v28  ;;  %v3202_v27 = vld [vmem:[%s4341_s1 + $0x370] ss:$24 sps:$4 sm:$0xff]   ;;  %v3207_v28 = vld [vmem:[%s4341_s1 + $0x69c] ss:$24 sps:$4 sm:$0xff]  }
  0x95   : > { %2263 = vmatprep.subr.bf16.mxu0 %v3120_v29  ;;  %v3205_v29 = vld [vmem:[%s4341_s1 + $0x698] ss:$24 sps:$4 sm:$0xff]  }
  0x97   : > { %2182 = vmatpush1.bf16.msra.mxu1 %v3115_v30  ;;  %v3208_v30 = vld [vmem:[%s4341_s1 + $0x3a0] ss:$24 sps:$4 sm:$0xff]  }
  0x98   : > { %2264 = vmatpush1.bf16.msra.mxu0 %v3118_v31  ;;  %2183 = vmatprep.subr.bf16.mxu1 %v3123_v32  ;;  %v3213_v31 = vld [vmem:[%s4341_s1 + $0x6cc] ss:$24 sps:$4 sm:$0xff]  }
  0x99   : > { %2265 = vmatprep.subr.bf16.mxu0 %v3126_v33  ;;  %v3216_v32 = vld [vmem:[%s4341_s1 + $0x3d4] ss:$24 sps:$4 sm:$0xff]   ;;  %v3211_v33 = vld [vmem:[%s4341_s1 + $0x6c8] ss:$24 sps:$4 sm:$0xff]  }
  0x9b   : > { %2184 = vmatpush1.bf16.msra.mxu1 %v3121_v35  ;;  %v3214_v35 = vld [vmem:[%s4341_s1 + $0x3d0] ss:$24 sps:$4 sm:$0xff]  }
  0x9c   : > { %2266 = vmatpush1.bf16.msra.mxu0 %v3124_v36  ;;  %2185 = vmatprep.subr.bf16.mxu1 %v3129_v37  ;;  %v3219_v36 = vld [vmem:[%s4341_s1 + $0x6fc] ss:$24 sps:$4 sm:$0xff]  }
  0x9d   : > { %2267 = vmatprep.subr.bf16.mxu0 %v3132_v38  ;;  %v3222_v37 = vld [vmem:[%s4341_s1 + $0x404] ss:$24 sps:$4 sm:$0xff]   ;;  %v3217_v38 = vld [vmem:[%s4341_s1 + $0x6f8] ss:$24 sps:$4 sm:$0xff]  }
  0x9f   : > { %2186 = vmatpush1.bf16.msra.mxu1 %v3127_v39  ;;  %v3220_v39 = vld [vmem:[%s4341_s1 + $0x400] ss:$24 sps:$4 sm:$0xff]  }
  0xa0   : > { %2268 = vmatpush1.bf16.msra.mxu0 %v3130_v40  ;;  %2187 = vmatprep.subr.bf16.mxu1 %v3135_v41  ;;  %v3225_v40 = vld [vmem:[%s4341_s1 + $0x72c] ss:$24 sps:$4 sm:$0xff]  }
  0xa1   : > { %2269 = vmatprep.subr.bf16.mxu0 %v3138_v42  ;;  %v3228_v41 = vld [vmem:[%s4341_s1 + $0x434] ss:$24 sps:$4 sm:$0xff]   ;;  %v3223_v42 = vld [vmem:[%s4341_s1 + $0x728] ss:$24 sps:$4 sm:$0xff]  }
  0xa3   : > { %2188 = vmatpush1.bf16.msra.mxu1 %v3133_v43  ;;  %v3226_v43 = vld [vmem:[%s4341_s1 + $0x430] ss:$24 sps:$4 sm:$0xff]  }
  0xa4   : > { %2270 = vmatpush1.bf16.msra.mxu0 %v3136_v44  ;;  %2189 = vmatprep.subr.bf16.mxu1 %v3141_v45  ;;  %v3231_v44 = vld [vmem:[%s4341_s1 + $0x75c] ss:$24 sps:$4 sm:$0xff]  }
  0xa5   : > { %2271 = vmatprep.subr.bf16.mxu0 %v3144_v46  ;;  %v3234_v45 = vld [vmem:[%s4341_s1 + $0x464] ss:$24 sps:$4 sm:$0xff]   ;;  %v3229_v46 = vld [vmem:[%s4341_s1 + $0x758] ss:$24 sps:$4 sm:$0xff]  }
  0xa7   : > { %2190 = vmatpush1.bf16.msra.mxu1 %v3139_v48  ;;  %v3232_v48 = vld [vmem:[%s4341_s1 + $0x460] ss:$24 sps:$4 sm:$0xff]  }
  0xa8   : > { %2272 = vmatpush1.bf16.msra.mxu0 %v3142_v49  ;;  %2191 = vmatprep.subr.bf16.mxu1 %v3147_v50  ;;  %v3237_v49 = vld [vmem:[%s4341_s1 + $0x78c] ss:$24 sps:$4 sm:$0xff]  }
  0xa9   : > { %2273 = vmatprep.subr.bf16.mxu0 %v3150_v52  ;;  %v3240_v50 = vld [vmem:[%s4341_s1 + $0x494] ss:$24 sps:$4 sm:$0xff]   ;;  %v3235_v52 = vld [vmem:[%s4341_s1 + $0x788] ss:$24 sps:$4 sm:$0xff]  }
  0xab   : > { %2192 = vmatpush1.bf16.msra.mxu1 %v3145_v53  ;;  %v3238_v53 = vld [vmem:[%s4341_s1 + $0x490] ss:$24 sps:$4 sm:$0xff]  }
  0xac   : > { %2274 = vmatpush1.bf16.msra.mxu0 %v3148_v54  ;;  %2193 = vmatprep.subr.bf16.mxu1 %v3153_v55  ;;  %v3243_v54 = vld [vmem:[%s4341_s1 + $0x7bc] ss:$24 sps:$4 sm:$0xff]  }
  0xad   : > { %2275 = vmatprep.subr.bf16.mxu0 %v3156_v56  ;;  %v3246_v55 = vld [vmem:[%s4341_s1 + $0x4c4] ss:$24 sps:$4 sm:$0xff]   ;;  %v3241_v56 = vld [vmem:[%s4341_s1 + $0x7b8] ss:$24 sps:$4 sm:$0xff]  }
  0xaf   : > { %2194 = vmatpush1.bf16.msra.mxu1 %v3151_v57  ;;  %v3244_v57 = vld [vmem:[%s4341_s1 + $0x4c0] ss:$24 sps:$4 sm:$0xff]  }
  0xb0   : > { %2276 = vmatpush1.bf16.msra.mxu0 %v3154_v58  ;;  %2195 = vmatprep.subr.bf16.mxu1 %v3159_v59  ;;  %v3249_v58 = vld [vmem:[%s4341_s1 + $0x7ec] ss:$24 sps:$4 sm:$0xff]  }
  0xb1   : > { %2277 = vmatprep.subr.bf16.mxu0 %v3162_v60  ;;  %v3252_v59 = vld [vmem:[%s4341_s1 + $0x4f4] ss:$24 sps:$4 sm:$0xff]   ;;  %v3247_v60 = vld [vmem:[%s4341_s1 + $0x7e8] ss:$24 sps:$4 sm:$0xff]  }
  0xb3   : > { %2196 = vmatpush1.bf16.msra.mxu1 %v3157_v61  ;;  %v3250_v61 = vld [vmem:[%s4341_s1 + $0x4f0] ss:$24 sps:$4 sm:$0xff]  }
  0xb4   : > { %2278 = vmatpush1.bf16.msra.mxu0 %v3160_v62  ;;  %2197 = vmatprep.subr.bf16.mxu1 %v3165_v63  ;;  %v3255_v62 = vld [vmem:[%s4341_s1 + $0x81c] ss:$24 sps:$4 sm:$0xff]  }
  0xb5   : > { %2279 = vmatprep.subr.bf16.mxu0 %v3168_v0  ;;  %v3258_v63 = vld [vmem:[%s4341_s1 + $0x524] ss:$24 sps:$4 sm:$0xff]   ;;  %v3253_v0 = vld [vmem:[%s4341_s1 + $0x818] ss:$24 sps:$4 sm:$0xff]  }
  0xb7   : > { %2198 = vmatpush1.bf16.msra.mxu1 %v3163_v1  ;;  %v3256_v1 = vld [vmem:[%s4341_s1 + $0x520] ss:$24 sps:$4 sm:$0xff]  }
  0xb8   : > { %2280 = vmatpush1.bf16.msra.mxu0 %v3166_v2  ;;  %2199 = vmatprep.subr.bf16.mxu1 %v3171_v3  ;;  %v3261_v2 = vld [vmem:[%s4341_s1 + $0x84c] ss:$24 sps:$4 sm:$0xff]  }
  0xb9   : > { %2281 = vmatprep.subr.bf16.mxu0 %v3174_v4  ;;  %v3264_v3 = vld [vmem:[%s4341_s1 + $0x554] ss:$24 sps:$4 sm:$0xff]   ;;  %v3259_v4 = vld [vmem:[%s4341_s1 + $0x848] ss:$24 sps:$4 sm:$0xff]  }
  0xbb   : > { %2200 = vmatpush1.bf16.msra.mxu1 %v3169_v5  ;;  %v3262_v5 = vld [vmem:[%s4341_s1 + $0x550] ss:$24 sps:$4 sm:$0xff]  }
  0xbc   : > { %2282 = vmatpush1.bf16.msra.mxu0 %v3172_v8  ;;  %2201 = vmatprep.subr.bf16.mxu1 %v3177_v9  ;;  %v3267_v8 = vld [vmem:[%s4341_s1 + $0x87c] ss:$24 sps:$4 sm:$0xff]  }
  0xbd   : > { %2283 = vmatprep.subr.bf16.mxu0 %v3180_v10  ;;  %v3270_v9 = vld [vmem:[%s4341_s1 + $0x584] ss:$24 sps:$4 sm:$0xff]   ;;  %v3265_v10 = vld [vmem:[%s4341_s1 + $0x878] ss:$24 sps:$4 sm:$0xff]  }
  0xbf   : > { %2202 = vmatpush1.bf16.msra.mxu1 %v3175_v11  ;;  %v3268_v11 = vld [vmem:[%s4341_s1 + $0x580] ss:$24 sps:$4 sm:$0xff]  }
  0xc0   : > { %2284 = vmatpush1.bf16.msra.mxu0 %v3178_v12  ;;  %2203 = vmatprep.subr.bf16.mxu1 %v3183_v13  ;;  %v3273_v12 = vld [vmem:[%s4341_s1 + $0x8ac] ss:$24 sps:$4 sm:$0xff]  }
  0xc1   : > { %2285 = vmatprep.subr.bf16.mxu0 %v3186_v15  ;;  %v3276_v13 = vld [vmem:[%s4341_s1 + $0x5b4] ss:$24 sps:$4 sm:$0xff]   ;;  %v3271_v15 = vld [vmem:[%s4341_s1 + $0x8a8] ss:$24 sps:$4 sm:$0xff]  }
  0xc3   : > { %2204 = vmatpush1.bf16.msra.mxu1 %v3181_v16  ;;  %v3274_v16 = vld [vmem:[%s4341_s1 + $0x5b0] ss:$24 sps:$4 sm:$0xff]  }
  0xc4   : > { %2286 = vmatpush1.bf16.msra.mxu0 %v3184_v17  ;;  %2214 = vmatprep.subr.bf16.mxu1 %v3189_v18  ;;  %v3279_v17 = vld [vmem:[%s4341_s1 + $0x8dc] ss:$24 sps:$4 sm:$0xff]  }
  0xc5   : > { %2296 = vmatprep.subr.bf16.mxu0 %v3192_v19  ;;  %v3282_v18 = vld [vmem:[%s4341_s1 + $0x5e4] ss:$24 sps:$4 sm:$0xff]   ;;  %v3277_v19 = vld [vmem:[%s4341_s1 + $0x8d8] ss:$24 sps:$4 sm:$0xff]  }
  0xc6   : > { %2206 = vmatmul.mubr.bf16.vlgmr.msra.gmra.mrb[4].mxu1 %v3599_v7 }
  0xc7   : > { %2288 = vmatmul.mubr.bf16.vlgmr.msra.gmra.mrb[4].mxu0 %v3597_v6  ;;  %2215 = vmatpush1.bf16.msra.mxu1 %v3187_v20  ;;  %v3204_v6 = vld [vmem:[%s4341_s1 + $0x374] ss:$24 sps:$4 sm:$0xff]   ;;  %v3280_v20 = vld [vmem:[%s4341_s1 + $0x5e0] ss:$24 sps:$4 sm:$0xff]  }
  0xc8   : > { %2297 = vmatpush1.bf16.msra.mxu0 %v3190_v21  ;;  %2216 = vmatprep.subr.bf16.mxu1 %v3195_v22  ;;  %v3285_v21 = vld [vmem:[%s4341_s1 + $0x614] ss:$24 sps:$4 sm:$0xff]   ;;  %v3283_v22 = vld [vmem:[%s4341_s1 + $0x610] ss:$24 sps:$4 sm:$0xff]  }
  0xc9   : > { %2298 = vmatprep.subr.bf16.mxu0 %v3198_v23  ;;  %2246 = vmatprep.mubr.bf16.mxu1 %v3684_v34  ;;  %v3288_v23 = vld [vmem:[%s4341_s1 + $0x644] ss:$24 sps:$4 sm:$0xff]  }
  0xca   : > { %2328 = vmatprep.mubr.bf16.mxu0 %v3539_v51  ;;  %v3210_v51 = vld [vmem:[%s4341_s1 + $0x3a4] ss:$24 sps:$4 sm:$0xff]  }
  0xcb   : > { %2217 = vmatpush1.bf16.msra.mxu1 %v3193_v24  ;;  %v3286_v24 = vld [vmem:[%s4341_s1 + $0x640] ss:$24 sps:$4 sm:$0xff]  }
  0xcc   : > { %2299 = vmatpush1.bf16.msra.mxu0 %v3196_v25  ;;  %2218 = vmatprep.subr.bf16.mxu1 %v3201_v47  ;;  %v3291_v25 = vld [vmem:[%s4341_s1 + $0x674] ss:$24 sps:$4 sm:$0xff]   ;;  %v3289_v47 = vld [vmem:[%s4341_s1 + $0x670] ss:$24 sps:$4 sm:$0xff]  }
  0xcd   : > { %2300 = vmatprep.subr.bf16.mxu0 %v3204_v6  ;;  %v3297_v6 = vld [vmem:[%s4341_s1 + $0x6d4] ss:$24 sps:$4 sm:$0xff]  }
  0xcf   : > { %2219 = vmatpush1.bf16.msra.mxu1 %v3199_v26  ;;  %v3295_v26 = vld [vmem:[%s4341_s1 + $0x6d0] ss:$24 sps:$4 sm:$0xff]  }
  0xd0   : > { %2301 = vmatpush1.bf16.msra.mxu0 %v3202_v27  ;;  %2220 = vmatprep.subr.bf16.mxu1 %v3207_v28  ;;  %v3300_v27 = vld [vmem:[%s4341_s1 + $0x704] ss:$24 sps:$4 sm:$0xff]   ;;  %v3298_v28 = vld [vmem:[%s4341_s1 + $0x700] ss:$24 sps:$4 sm:$0xff]  }
  0xd1   : > { %2302 = vmatprep.subr.bf16.mxu0 %v3210_v51  ;;  %v3303_v51 = vld [vmem:[%s4341_s1 + $0x734] ss:$24 sps:$4 sm:$0xff]  }
  0xd3   : > { %2221 = vmatpush1.bf16.msra.mxu1 %v3205_v29 }
  0xd4   : > { %2303 = vmatpush1.bf16.msra.mxu0 %v3208_v30  ;;  %2222 = vmatprep.subr.bf16.mxu1 %v3213_v31  ;;  %v3301_v31 = vld [vmem:[%s4341_s1 + $0x730] ss:$24 sps:$4 sm:$0xff]  }
  0xd5   : > { %2304 = vmatprep.subr.bf16.mxu0 %v3216_v32 }
  0xd7   : > { %2223 = vmatpush1.bf16.msra.mxu1 %v3211_v33  ;;  %v3306_v33 = vld [vmem:[%s4341_s1 + $0x764] ss:$24 sps:$4 sm:$0xff]  }
  0xd8   : > { %2305 = vmatpush1.bf16.msra.mxu0 %v3214_v35  ;;  %2224 = vmatprep.subr.bf16.mxu1 %v3219_v36  ;;  %v3304_v36 = vld [vmem:[%s4341_s1 + $0x760] ss:$24 sps:$4 sm:$0xff]  }
  0xd9   : > { %2306 = vmatprep.subr.bf16.mxu0 %v3222_v37  ;;  %v3309_v37 = vld [vmem:[%s4341_s1 + $0x794] ss:$24 sps:$4 sm:$0xff]  }
  0xdb   : > { %2225 = vmatpush1.bf16.msra.mxu1 %v3217_v38  ;;  %v3307_v38 = vld [vmem:[%s4341_s1 + $0x790] ss:$24 sps:$4 sm:$0xff]  }
  0xdc   : > { %2307 = vmatpush1.bf16.msra.mxu0 %v3220_v39  ;;  %2226 = vmatprep.subr.bf16.mxu1 %v3225_v40  ;;  %v3312_v39 = vld [vmem:[%s4341_s1 + $0x7c4] ss:$24 sps:$4 sm:$0xff]   ;;  %v3310_v40 = vld [vmem:[%s4341_s1 + $0x7c0] ss:$24 sps:$4 sm:$0xff]  }
  0xdd   : > { %2308 = vmatprep.subr.bf16.mxu0 %v3228_v41  ;;  %v3315_v41 = vld [vmem:[%s4341_s1 + $0x7f4] ss:$24 sps:$4 sm:$0xff]  }
  0xdf   : > { %2227 = vmatpush1.bf16.msra.mxu1 %v3223_v42  ;;  %v3313_v42 = vld [vmem:[%s4341_s1 + $0x7f0] ss:$24 sps:$4 sm:$0xff]  }
  0xe0   : > { %2309 = vmatpush1.bf16.msra.mxu0 %v3226_v43  ;;  %2228 = vmatprep.subr.bf16.mxu1 %v3231_v44  ;;  %v3318_v43 = vld [vmem:[%s4341_s1 + $0x824] ss:$24 sps:$4 sm:$0xff]   ;;  %v3316_v44 = vld [vmem:[%s4341_s1 + $0x820] ss:$24 sps:$4 sm:$0xff]  }
  0xe1   : > { %2310 = vmatprep.subr.bf16.mxu0 %v3234_v45  ;;  %v3321_v45 = vld [vmem:[%s4341_s1 + $0x854] ss:$24 sps:$4 sm:$0xff]  }
  0xe3   : > { %2229 = vmatpush1.bf16.msra.mxu1 %v3229_v46  ;;  %v3319_v46 = vld [vmem:[%s4341_s1 + $0x850] ss:$24 sps:$4 sm:$0xff]  }
  0xe4   : > { %2311 = vmatpush1.bf16.msra.mxu0 %v3232_v48  ;;  %2230 = vmatprep.subr.bf16.mxu1 %v3237_v49  ;;  %v3324_v48 = vld [vmem:[%s4341_s1 + $0x884] ss:$24 sps:$4 sm:$0xff]   ;;  %v3322_v49 = vld [vmem:[%s4341_s1 + $0x880] ss:$24 sps:$4 sm:$0xff]  }
  0xe5   : > { %2312 = vmatprep.subr.bf16.mxu0 %v3240_v50  ;;  %v3327_v50 = vld [vmem:[%s4341_s1 + $0x8b4] ss:$24 sps:$4 sm:$0xff]  }
  0xe7   : > { %2231 = vmatpush1.bf16.msra.mxu1 %v3235_v52  ;;  %v3325_v52 = vld [vmem:[%s4341_s1 + $0x8b0] ss:$24 sps:$4 sm:$0xff]  }
  0xe8   : > { %2313 = vmatpush1.bf16.msra.mxu0 %v3238_v53  ;;  %2232 = vmatprep.subr.bf16.mxu1 %v3243_v54  ;;  %v3330_v53 = vld [vmem:[%s4341_s1 + $0x8e4] ss:$24 sps:$4 sm:$0xff]   ;;  %v3328_v54 = vld [vmem:[%s4341_s1 + $0x8e0] ss:$24 sps:$4 sm:$0xff]  }
  0xe9   : > { %2314 = vmatprep.subr.bf16.mxu0 %v3246_v55  ;;  %v518_v55 = vlaneseq }
  0xeb   : > { %2233 = vmatpush1.bf16.msra.mxu1 %v3241_v56  ;;  %v519_v56 = vshrl.u32 %v518_v55, 7 }
  0xec   : > { %2315 = vmatpush1.bf16.msra.mxu0 %v3244_v57  ;;  %2234 = vmatprep.subr.bf16.mxu1 %v3249_v58  ;;  %v516_v58 = vld [vmem:[%s4342_s2] sm:$0x3f] }
  0xed   : > { %2316 = vmatprep.subr.bf16.mxu0 %v3252_v59  ;;  %v4294_v57 = vsub.s32 0, %v519_v56  ;;  %v4299_v59 = vsub.s32 1, %v519_v56 }
  0xef   : > { %2235 = vmatpush1.bf16.msra.mxu1 %v3247_v60  ;;  %v521_v60 = vrot.slane %v516_v58, %v4294_v57 }
  0xf0   : > { %2317 = vmatpush1.bf16.msra.mxu0 %v3250_v61  ;;  %2236 = vmatprep.subr.bf16.mxu1 %v3255_v62  ;;  %v525_v61 = vrot.slane %v516_v58, %v4299_v59 }
  0xf1   : > { %2318 = vmatprep.subr.bf16.mxu0 %v3258_v63 }
  0xf3   : > { %2237 = vmatpush1.bf16.msra.mxu1 %v3253_v0 }
  0xf4   : > { %2319 = vmatpush1.bf16.msra.mxu0 %v3256_v1  ;;  %2238 = vmatprep.subr.bf16.mxu1 %v3261_v2 }
  0xf5   : > { %2320 = vmatprep.subr.bf16.mxu0 %v3264_v3 }
  0xf7   : > { %2239 = vmatpush1.bf16.msra.mxu1 %v3259_v4 }
  0xf8   : > { %2321 = vmatpush1.bf16.msra.mxu0 %v3262_v5  ;;  %2240 = vmatprep.subr.bf16.mxu1 %v3267_v8 }
  0xf9   : > { %2322 = vmatprep.subr.bf16.mxu0 %v3270_v9 }
  0xfb   : > { %2241 = vmatpush1.bf16.msra.mxu1 %v3265_v10 }
  0xfc   : > { %2323 = vmatpush1.bf16.msra.mxu0 %v3268_v11  ;;  %2242 = vmatprep.subr.bf16.mxu1 %v3273_v12  ;;  %v4303_v11 = vsub.s32 2, %v519_v56 }
  0xfd   : > { %2324 = vmatprep.subr.bf16.mxu0 %v3276_v13  ;;  %v4306_v13 = vsub.s32 3, %v519_v56 }
  0xfe   : > { %v529_v12 = vrot.slane %v516_v58, %v4303_v11 }
  0xff   : > { %2243 = vmatpush1.bf16.msra.mxu1 %v3271_v15 }
 0x100   : > { %2325 = vmatpush1.bf16.msra.mxu0 %v3274_v16  ;;  %2244 = vmatprep.subr.bf16.mxu1 %v3279_v17  ;;  %v533_v16 = vrot.slane %v516_v58, %v4306_v13  ;;  %v4309_v17 = vsub.s32 4, %v519_v56 }
 0x101   : > { %2326 = vmatprep.subr.bf16.mxu0 %v3282_v18  ;;  %v4311_v18 = vsub.s32 5, %v519_v56 }
 0x103   : > { %2245 = vmatpush1.bf16.msra.mxu1 %v3277_v19 }
 0x104   : > { %2327 = vmatpush1.bf16.msra.mxu0 %v3280_v20 }
 0x105   : > { %2337 = vmatprep.subr.bf16.mxu0 %v3285_v21 }
 0x106   : > { %2247 = vmatmul.mubr.bf16.vlgmr.msra.gmra.mrb[4].mxu1 %v3806_v14 }
 0x107   : > { %2329 = vmatmul.mubr.bf16.vlgmr.msra.gmra.mrb[4].mxu0 %v3599_v7  ;;  %v3294_v7 = vld [vmem:[%s4341_s1 + $0x6a4] ss:$24 sps:$4 sm:$0xff]  }
 0x108   : > { %2338 = vmatpush1.bf16.msra.mxu0 %v3283_v22  ;;  %2369 = vmatprep.mubr.bf16.mxu0 %v3684_v34  ;;  %v3292_v34 = vld [vmem:[%s4341_s1 + $0x6a0] ss:$24 sps:$4 sm:$0xff]   ;;  %v537_v22 = vrot.slane %v516_v58, %v4309_v17 }
 0x109   : > { %2339 = vmatprep.subr.bf16.mxu0 %v3288_v23  ;;  %v541_v23 = vrot.slane %v516_v58, %v4311_v18 }
 0x10c   : > { %2340 = vmatpush1.bf16.msra.mxu0 %v3286_v24 }
 0x10d   : > { %2341 = vmatprep.subr.bf16.mxu0 %v3291_v25 }
 0x110   : > { %2342 = vmatpush1.bf16.msra.mxu0 %v3289_v47 }
 0x111   : > { %2343 = vmatprep.subr.bf16.mxu0 %v3294_v7 }
 0x114   : > { %2344 = vmatpush1.bf16.msra.mxu0 %v3292_v34 }
 0x115   : > { %2345 = vmatprep.subr.bf16.mxu0 %v3297_v6 }
 0x118   : > { %2346 = vmatpush1.bf16.msra.mxu0 %v3295_v26 }
 0x119   : > { %2347 = vmatprep.subr.bf16.mxu0 %v3300_v27  ;;  %v2043_v29 = vpop.f32.mrb[0].mxu1 }
 0x11a   : > { %v2045_v30 = vpop.f32.mrb[1].mxu1  ;;  %v2044_v62 = vadd.f32 %v2043_v29, %v521_v60 }
 0x11b   : > { %v2047_v32 = vpop.f32.mrb[2].mxu1  ;;  %v2046_v63 = vadd.f32 %v2045_v30, %v525_v61 }
 0x11c   : > { %2348 = vmatpush1.bf16.msra.mxu0 %v3298_v28  ;;  %v2048_v35 = vpop.f32.mrb[3].mxu1 }
 0x11d   : > { %2349 = vmatprep.subr.bf16.mxu0 %v3303_v51 }
 0x120   : > { %2350 = vmatpush1.bf16.msra.mxu0 %v3301_v31 }
 0x121   : > { %2351 = vmatprep.subr.bf16.mxu0 %v3306_v33 }
 0x124   : > { %2352 = vmatpush1.bf16.msra.mxu0 %v3304_v36 }
 0x125   : > { %2353 = vmatprep.subr.bf16.mxu0 %v3309_v37 }
 0x128   : > { %2354 = vmatpush1.bf16.msra.mxu0 %v3307_v38 }
 0x129   : > { %2355 = vmatprep.subr.bf16.mxu0 %v3312_v39 }
 0x12c   : > { %2356 = vmatpush1.bf16.msra.mxu0 %v3310_v40 }
 0x12d   : > { %2357 = vmatprep.subr.bf16.mxu0 %v3315_v41 }
 0x130   : > { %2358 = vmatpush1.bf16.msra.mxu0 %v3313_v42 }
 0x131   : > { %2359 = vmatprep.subr.bf16.mxu0 %v3318_v43 }
 0x134   : > { %2360 = vmatpush1.bf16.msra.mxu0 %v3316_v44 }
 0x135   : > { %2361 = vmatprep.subr.bf16.mxu0 %v3321_v45 }
 0x138   : > { %2362 = vmatpush1.bf16.msra.mxu0 %v3319_v46 }
 0x139   : > { %2363 = vmatprep.subr.bf16.mxu0 %v3324_v48 }
 0x13c   : > { %2364 = vmatpush1.bf16.msra.mxu0 %v3322_v49 }
 0x13d   : > { %2365 = vmatprep.subr.bf16.mxu0 %v3327_v50 }
 0x140   : > { %2366 = vmatpush1.bf16.msra.mxu0 %v3325_v52 }
 0x141   : > { %2367 = vmatprep.subr.bf16.mxu0 %v3330_v53  ;;  %v2415_v53 = vld [vmem:[%s4343_s3] sm:$0x3f] }
 0x142   : > { %v2420_v55 = vrot.slane %v2415_v53, %v4294_v57  ;;  %v2424_v58 = vrot.slane %v2415_v53, %v4299_v59  ;;  %v2428_v61 = vrot.slane %v2415_v53, %v4303_v11 }
 0x144   : > { %2368 = vmatpush1.bf16.msra.mxu0 %v3328_v54  ;;  %v2453_v54 = vld [vmem:[%s4344_s4] sm:$0x3f] }
 0x145   : > { %v2458_v56 = vrot.slane %v2453_v54, %v4294_v57  ;;  %v2462_v60 = vrot.slane %v2453_v54, %v4299_v59  ;;  %v2474_v59 = vrot.slane %v2453_v54, %v4309_v17 }
 0x147   : > { %2370 = vmatmul.mubr.bf16.vlgmr.msra.gmra.mrb[4].mxu0 %v3806_v14 }
 0x15a   : > { %v2125_v0 = vpop.f32.mrb[0].mxu0 }
 0x15b   : > { %v2856_v1 = vadd.f32 %v2125_v0, %v2044_v62  ;;  %v2127_v2 = vpop.f32.mrb[1].mxu0  ;;  %v2432_v62 = vrot.slane %v2415_v53, %v4306_v13  ;;  %v2466_v0 = vrot.slane %v2453_v54, %v4303_v11 }
 0x15c   : > { %v2858_v14 = vadd.f32 %v2127_v2, %v2046_v63  ;;  %v2129_v3 = vpop.f32.mrb[2].mxu0  ;;  %v2436_v2 = vrot.slane %v2415_v53, %v4309_v17 }
 0x15d   : > { %v2130_v4 = vpop.f32.mrb[3].mxu0 }
 0x15e   : > { %v2378_v19 = vadd.f32 %v2858_v14, %v2856_v1 }
 0x1d9   : > { %v2248_v5 = vpop.f32.mrb[4].mxu1 }
 0x1da   : > { %v2250_v8 = vpop.f32.mrb[5].mxu1  ;;  %v2859_v15 = vadd.f32 %v2248_v5, %v529_v12 }
 0x1db   : > { %v2252_v9 = vpop.f32.mrb[6].mxu1  ;;  %v2860_v21 = vadd.f32 %v2250_v8, %v533_v16  ;;  %v2478_v8 = vrot.slane %v2453_v54, %v4311_v18 }
 0x1dc   : > { %v2253_v10 = vpop.f32.mrb[7].mxu1  ;;  %v2379_v20 = vadd.f32 %v2859_v15, %v2378_v19 }
 0x1de   : > { %v2380_v25 = vadd.f32 %v2860_v21, %v2379_v20 }
 0x21a   : > { %v2371_v24 = vpop.f32.mrb[4].mxu0 }
 0x21b   : > { %v2861_v47 = vadd.f32 %v2371_v24, %v537_v22  ;;  %v2373_v7 = vpop.f32.mrb[5].mxu0 }
 0x21c   : > { %v2862_v34 = vadd.f32 %v2373_v7, %v541_v23  ;;  %v2375_v6 = vpop.f32.mrb[6].mxu0 }
 0x21d   : > { %v2376_v26 = vpop.f32.mrb[7].mxu0  ;;  %v2381_v27 = vadd.f32 %v2861_v47, %v2380_v25 }
 0x21f   : > { %v2382_v28 = vadd.f32 %v2862_v34, %v2381_v27 }
 0x221   : > { %2383 = vadd.xlane.f32.xlu0 %v2382_v28 }
 0x2ae   : > { %v2384_v51 = vpop.xlane.xlu0 %2383 }
 0x2af   : > { %v2386_v29 = vmul.f32 0.0013020834, %v2384_v51 }
 0x2b1   : > { %v2387_v30 = vsub.f32 %v2856_v1, %v2386_v29  ;;  %v2388_v31 = vsub.f32 %v2858_v14, %v2386_v29  ;;  %v2389_v32 = vsub.f32 %v2859_v15, %v2386_v29  ;;  %v2390_v33 = vsub.f32 %v2860_v21, %v2386_v29 }
 0x2b2   : > { %v2391_v37 = vsub.f32 %v2861_v47, %v2386_v29  ;;  %v2392_v40 = vsub.f32 %v2862_v34, %v2386_v29  ;;  %v2470_v1 = vrot.slane %v2453_v54, %v4306_v13  ;;  %v2440_v14 = vrot.slane %v2415_v53, %v4311_v18 }
 0x2b3   : > { %v2393_v35 = vmul.f32 %v2387_v30, %v2387_v30  ;;  %v2394_v36 = vmul.f32 %v2388_v31, %v2388_v31  ;;  %v2395_v38 = vmul.f32 %v2389_v32, %v2389_v32  ;;  %v2396_v41 = vmul.f32 %v2390_v33, %v2390_v33 }
 0x2b4   : > { %v2397_v43 = vmul.f32 %v2391_v37, %v2391_v37  ;;  %v2398_v45 = vmul.f32 %v2392_v40, %v2392_v40 }
 0x2b5   : > { %v2399_v39 = vadd.f32 %v2394_v36, %v2393_v35 }
 0x2b7   : > { %v2400_v42 = vadd.f32 %v2399_v39, %v2395_v38 }
 0x2b9   : > { %v2401_v44 = vadd.f32 %v2400_v42, %v2396_v41 }
 0x2bb   : > { %v2402_v46 = vadd.f32 %v2401_v44, %v2397_v43 }
 0x2bd   : > { %v2403_v48 = vadd.f32 %v2402_v46, %v2398_v45 }
 0x2bf   : > { %2404 = vadd.xlane.f32.xlu0 %v2403_v48 }
 0x34c   : > { %v2405_v49 = vpop.xlane.xlu0 %2404 }
 0x34d   : > { %v2406_v50 = vmul.f32 0.0013020834, %v2405_v49 }
 0x34f   : > { %v2407_v52 = vadd.f32 1e-06, %v2406_v50 }
 0x351   : > { %3331 = vrsqrt.f32 %v2407_v52 }
 0x35b   : > { %v3332_v63 = vpop.eup %3331 }
 0x35c   : > { %v2409_v3 = vmul.f32 %v3332_v63, %v2387_v30  ;;  %v2410_v57 = vmul.f32 %v3332_v63, %v2388_v31  ;;  %v2411_v4 = vmul.f32 %v3332_v63, %v2389_v32  ;;  %v2412_v5 = vmul.f32 %v3332_v63, %v2390_v33 }
 0x35d   : > { %v2413_v9 = vmul.f32 %v3332_v63, %v2391_v37  ;;  %v2414_v10 = vmul.f32 %v3332_v63, %v2392_v40 }
 0x35e   : > { %v2447_v12 = vmul.f32 %v2420_v55, %v2409_v3  ;;  %v2448_v15 = vmul.f32 %v2424_v58, %v2410_v57  ;;  %v2449_v16 = vmul.f32 %v2428_v61, %v2411_v4  ;;  %v2450_v11 = vmul.f32 %v2432_v62, %v2412_v5 }
 0x35f   : > { %v2451_v13 = vmul.f32 %v2436_v2, %v2413_v9  ;;  %v2452_v19 = vmul.f32 %v2440_v14, %v2414_v10 }
 0x360   : > { %v2485_v20 = vadd.f32 %v2458_v56, %v2447_v12  ;;  %v2486_v21 = vadd.f32 %v2462_v60, %v2448_v15  ;;  %v2487_v22 = vadd.f32 %v2466_v0, %v2449_v16  ;;  %v2488_v23 = vadd.f32 %v2470_v1, %v2450_v11 }
 0x361   : > { %v2489_v24 = vadd.f32 %v2474_v59, %v2451_v13  ;;  %v2490_v17 = vadd.f32 %v2478_v8, %v2452_v19 }
 0x362   : > { %2491 = vst [vmem:[%s224_s11] sm:$0xff] %v2485_v20  ;;  %2492 = vst [vmem:[%s224_s11 + $0x8] sm:$0xff] %v2486_v21 }
 0x363   : > { %2493 = vst [vmem:[%s224_s11 + $0x10] sm:$0xff] %v2487_v22  ;;  %2494 = vst [vmem:[%s224_s11 + $0x18] sm:$0xff] %v2488_v23 }
 0x364   : > { %2495 = vst [vmem:[%s224_s11 + $0x20] sm:$0xff] %v2489_v24  ;;  %2496 = vst [vmem:[%s224_s11 + $0x28] sm:$0xff] %v2490_v17 }
 0x365 PF: > { %s15_s18 = sadd.s32 1, %s3339_s18  }
 0x366   : > { %p12_p4 = scmp.ge.s32.totalorder %s15_s18, 5  }
 0x368   :  { %14 = sbr.rel (!%p12_p4) target bundleno = 1 (0x1), region = 70 }

</bundles_post_ra>
